<compile_context>
chip_gen: v7x
topology: tpu7x:2x2x1
jax: 0.10.0
libtpu: 0.0.40
codegen_flags: <defaults>
</compile_context>

<pallas_src>
import functools

import jax
import jax.numpy as jnp
from jax.experimental import pallas as pl
from jax.experimental.pallas import tpu as pltpu


def _cdiv(a, b):
    return -(-a // b)


def attention_classifier_kernel(
    x_ref,        # (BT*S, D_in)  float32 (cast to compute dtype in-kernel)
    w_in_ref,     # (D_in, H)     compute dtype (pre-transposed)
    b_in_ref,     # (1, H)        f32
    w_att_ref,    # (H, A)        compute dtype (pre-transposed)
    b_att_ref,    # (1, A)        f32
    w_comb_ref,   # (1, A)        f32
    b_comb_ref,   # (1, 1)        f32
    w_out_ref,    # (H, O)        compute dtype (pre-transposed)
    b_out_ref,    # (1, O)        f32
    o_ref,        # (BT, O)       f32
    *,
    seq_len,
    approx_recip,
):
    rows, _ = x_ref.shape
    BT = rows // seq_len
    H = w_in_ref.shape[1]
    A = w_att_ref.shape[1]
    cdt = w_in_ref.dtype

    # In-kernel cast (VPU, hidden under the MXU) -- x is DMA'd as f32.
    x2 = x_ref[...].astype(cdt)                                   # (BT*S, D_in)

    # h = linear_in(x): (BT*S, H), f32 accumulation on the MXU.
    h2 = (
        jnp.dot(x2, w_in_ref[...], preferred_element_type=jnp.float32)
        + b_in_ref[...]
    )

    # a = tanh(attention(h)): (BT*S, A)
    a2 = jnp.tanh(
        jnp.dot(h2.astype(cdt), w_att_ref[...],
                preferred_element_type=jnp.float32)
        + b_att_ref[...]
    )

    # Split the row axis back into (batch, seq).  These reshapes only split the
    # sublane/major axis (lane dim H / A is preserved), so they are
    # layout-preserving when S is a multiple of 8.
    a3 = a2.reshape(BT, seq_len, A)
    h3 = h2.reshape(BT, seq_len, H)

    # attention_combine has one output feature -> elementwise mul + lane
    # reduction (VPU/XLU), keepdims so the seq axis stays in one layout.
    scores = (
        jnp.sum(a3 * w_comb_ref[...], axis=-1, keepdims=True)
        + b_comb_ref[...]
    )                                                              # (BT, S, 1)

    # softmax over the sequence axis (PyTorch dim=1), all in (BT, S, 1) layout.
    m = jnp.max(scores, axis=1, keepdims=True)                     # (BT, 1, 1)
    e = jnp.exp(scores - m)                                        # (BT, S, 1)
    denom = jnp.sum(e, axis=1, keepdims=True)                      # (BT, 1, 1)
    if approx_recip:
        attn_w = e * pl.reciprocal(denom, approx=True)             # EUP slot
    else:
        attn_w = e / denom                                         # exact path

    # NOTE: for a ragged last batch block, rows beyond B hold garbage (may be
    # Inf/NaN through exp).  Batch rows are fully independent here and the
    # corresponding output rows are masked by Pallas, so this is benign.

    # context = sum(attn_w * h, dim=seq): (BT, H)
    context = jnp.sum(attn_w * h3, axis=1)

    # out = fc_output(context): (BT, O)
    out = (
        jnp.dot(context.astype(cdt), w_out_ref[...],
                preferred_element_type=jnp.float32)
        + b_out_ref[...]
    )
    o_ref[...] = out.astype(o_ref.dtype)


def _vmem_budget():
    """Generation-aware VMEM budget: ~3/4 of physical, capped at 96 MiB.

    v5e/v6e (128 MiB physical) -> 96 MiB, v7x (64 MiB physical) -> 48 MiB.
    Falls back to a v7x-safe 48 MiB if the hardware query is unavailable.
    """
    cap = 64 * 1024 * 1024
    try:
        cap = int(pltpu.get_tpu_info().vmem_capacity_bytes)
    except Exception:
        pass
    return min((cap * 3) // 4, 96 * 1024 * 1024)


def _pick_batch_tile(B, S, D_in, H, A, O, itemsize, vmem_budget,
                     target_rows=512):
    """Pick BT: >=512 matmul rows per step, within the chip's VMEM budget."""
    bt = min(B, max(1, _cdiv(target_rows, S)))

    # Resident weights/biases, conservatively counted as double-buffered.
    weight_bytes = 2 * (D_in * H + H * A + H * O) * itemsize
    weight_bytes += 2 * (H + 2 * A + 1 + O) * 4

    def working_set(b):
        x_tile = 2 * b * S * D_in * 4           # double-buffered f32 input slab
        inter = b * S * (H + A) * 4 * 2         # f32 intermediates + headroom
        out_tile = 2 * b * O * 4                # double-buffered f32 output
        return weight_bytes + x_tile + inter + out_tile

    while bt > 1 and working_set(bt) > vmem_budget:
        bt = max(1, bt // 2)

    # v7x megacore: keep the grid step count even so both TensorCores get equal
    # work (no-op on single-TC v5e/v6e).
    steps = _cdiv(B, bt)
    if steps > 1 and steps % 2 == 1:
        bt_even = max(1, _cdiv(B, steps + 1))
        if _cdiv(B, bt_even) % 2 == 0:
            bt = bt_even
    return bt


def attention_classifier(x, params, compute_dtype=jnp.bfloat16,
                         batch_tile=None, vmem_budget=None):
    """x: (B, S, D_in) float32. params: dict of weights/biases (PyTorch layout)."""
    B, S, D_in = x.shape
    w_in, b_in = params["w_in"], params["b_in"]          # (H, D_in), (H,)
    w_att, b_att = params["w_att"], params["b_att"]      # (A, H), (A,)
    w_comb, b_comb = params["w_comb"], params["b_comb"]  # (1, A), (1,)
    w_out, b_out = params["w_out"], params["b_out"]      # (O, H), (O,)
    H = w_in.shape[0]
    A = w_att.shape[0]
    O = w_out.shape[0]

    itemsize = jnp.dtype(compute_dtype).itemsize
    budget = vmem_budget if vmem_budget is not None else _vmem_budget()
    BT = batch_tile if batch_tile is not None else _pick_batch_tile(
        B, S, D_in, H, A, O, itemsize, budget)
    steps = _cdiv(B, BT)

    # Pre-flatten x to 2D (free, contiguous reshape) -- the DMA presents each
    # grid step with a lane-dense (BT*S, D_in) slab; x stays f32 in HBM and is
    # cast in-kernel.  No pad pass: the ragged last block is masked by Pallas.
    x2d = x.reshape(B * S, D_in)

    # One-time wrapper-side pre-transpose + cast of the (small) weights.
    w_in_t = w_in.T.astype(compute_dtype)                # (D_in, H)
    w_att_t = w_att.T.astype(compute_dtype)              # (H, A)
    w_out_t = w_out.T.astype(compute_dtype)              # (H, O)
    b_in2 = b_in.reshape(1, H).astype(jnp.float32)
    b_att2 = b_att.reshape(1, A).astype(jnp.float32)
    w_comb2 = w_comb.reshape(1, A).astype(jnp.float32)
    b_comb2 = b_comb.reshape(1, 1).astype(jnp.float32)
    b_out2 = b_out.reshape(1, O).astype(jnp.float32)

    rep0 = lambda b: (0, 0)

    flops = 2 * B * S * (D_in * H + H * A + A + H) + 2 * B * H * O
    transcendentals = B * S * (A + 1)                    # tanh + exp
    bytes_accessed = (
        x2d.size * 4
        + (w_in_t.size + w_att_t.size + w_out_t.size) * itemsize
        + (b_in2.size + b_att2.size + w_comb2.size + b_comb2.size
           + b_out2.size) * 4
        + B * O * 4
    )

    kernel = functools.partial(
        attention_classifier_kernel,
        seq_len=S,
        approx_recip=(jnp.dtype(compute_dtype) != jnp.dtype(jnp.float32)),
    )

    out = pl.pallas_call(
        kernel,
        out_shape=jax.ShapeDtypeStruct((B, O), jnp.float32),
        grid_spec=pltpu.PrefetchScalarGridSpec(
            num_scalar_prefetch=0,
            grid=(steps,),
            in_specs=[
                pl.BlockSpec((BT * S, D_in), lambda b: (b, 0)),
                pl.BlockSpec((D_in, H), rep0),
                pl.BlockSpec((1, H), rep0),
                pl.BlockSpec((H, A), rep0),
                pl.BlockSpec((1, A), rep0),
                pl.BlockSpec((1, A), rep0),
                pl.BlockSpec((1, 1), rep0),
                pl.BlockSpec((H, O), rep0),
                pl.BlockSpec((1, O), rep0),
            ],
            out_specs=pl.BlockSpec((BT, O), lambda b: (b, 0)),
        ),
        compiler_params=pltpu.CompilerParams(
            dimension_semantics=("parallel",),
            vmem_limit_bytes=budget,
        ),
        cost_estimate=pl.CostEstimate(
            flops=flops,
            transcendentals=transcendentals,
            bytes_accessed=bytes_accessed,
        ),
    )(x2d, w_in_t, b_in2, w_att_t, b_att2, w_comb2, b_comb2, w_out_t, b_out2)

    return out


def reference_forward(x, params):
    """Pure-JAX reference matching the PyTorch module semantics."""
    h = x @ params["w_in"].T + params["b_in"]                       # (B, S, H)
    a = jnp.tanh(h @ params["w_att"].T + params["b_att"])           # (B, S, A)
    scores = a @ params["w_comb"].T + params["b_comb"]              # (B, S, 1)
    attn_w = jax.nn.softmax(scores, axis=1)                         # softmax over seq
    context = jnp.sum(attn_w * h, axis=1)                           # (B, H)
    return context @ params["w_out"].T + params["b_out"]            # (B, O)


def init_params(key, input_dim, hidden_dim, attention_dim, output_dim):
    ks = jax.random.split(key, 8)

    def linear(kw, kb, out_f, in_f):
        bound = 1.0 / (in_f ** 0.5)
        w = jax.random.uniform(kw, (out_f, in_f), jnp.float32, -bound, bound)
        b = jax.random.uniform(kb, (out_f,), jnp.float32, -bound, bound)
        return w, b

    w_in, b_in = linear(ks[0], ks[1], hidden_dim, input_dim)
    w_att, b_att = linear(ks[2], ks[3], attention_dim, hidden_dim)
    w_comb, b_comb = linear(ks[4], ks[5], 1, attention_dim)
    w_out, b_out = linear(ks[6], ks[7], output_dim, hidden_dim)
    return dict(
        w_in=w_in, b_in=b_in,
        w_att=w_att, b_att=b_att,
        w_comb=w_comb, b_comb=b_comb,
        w_out=w_out, b_out=b_out,
    )


if __name__ == "__main__":
    B, S = 2, 8
    input_dim, hidden_dim, attention_dim, output_dim = 16, 32, 16, 4

    key = jax.random.PRNGKey(0)
    kx, kp = jax.random.split(key)
    x = jax.random.normal(kx, (B, S, input_dim), jnp.float32)
    params = init_params(kp, input_dim, hidden_dim, attention_dim, output_dim)

    ref = reference_forward(x, params)

    # bf16 matmul operands + approx reciprocal -> loose tolerance vs f32 ref.
    out = jax.block_until_ready(attention_classifier(x, params))
    assert out.shape == (B, output_dim)
    assert jnp.allclose(out, ref, atol=5e-2, rtol=5e-2), (out, ref)

    # f32 compute path (exact divide in softmax): tight check.
    out_f32 = jax.block_until_ready(
        attention_classifier(x, params, compute_dtype=jnp.float32))
    assert jnp.allclose(out_f32, ref, atol=5e-3, rtol=5e-3), (out_f32, ref)

    print("KERNEL_OK")
</pallas_src>

<mosaic_0001>
module attributes {stable_mosaic.version = 11 : i64} {
  func.func @attention_classifier_kernel(%arg0: i32, %arg1: memref<16x16xf32, #tpu.memory_space<vmem>>, %arg2: memref<16x32xbf16, #tpu.memory_space<vmem>>, %arg3: memref<1x32xf32, #tpu.memory_space<vmem>>, %arg4: memref<32x16xbf16, #tpu.memory_space<vmem>>, %arg5: memref<1x16xf32, #tpu.memory_space<vmem>>, %arg6: memref<1x16xf32, #tpu.memory_space<vmem>>, %arg7: memref<1x1xf32, #tpu.memory_space<vmem>>, %arg8: memref<32x4xbf16, #tpu.memory_space<vmem>>, %arg9: memref<1x4xf32, #tpu.memory_space<vmem>>, %arg10: memref<2x4xf32, #tpu.memory_space<vmem>>) attributes {dimension_semantics = [#tpu.dimension_semantics<parallel>], iteration_bounds = array<i64: 1>, scalar_prefetch = 0 : i64, scratch_operands = 0 : i64, tpu.core_type = #tpu.core_type<tc>, window_params = [{transform_indices = @transform_0, window_bounds = array<i64: 16, 16>}, {pipeline_mode = #tpu.pipeline_mode<synchronous>, transform_indices = @transform_1, window_bounds = array<i64: 16, 32>}, {pipeline_mode = #tpu.pipeline_mode<synchronous>, transform_indices = @transform_2, window_bounds = array<i64: 1, 32>}, {pipeline_mode = #tpu.pipeline_mode<synchronous>, transform_indices = @transform_3, window_bounds = array<i64: 32, 16>}, {pipeline_mode = #tpu.pipeline_mode<synchronous>, transform_indices = @transform_4, window_bounds = array<i64: 1, 16>}, {pipeline_mode = #tpu.pipeline_mode<synchronous>, transform_indices = @transform_5, window_bounds = array<i64: 1, 16>}, {pipeline_mode = #tpu.pipeline_mode<synchronous>, transform_indices = @transform_6, window_bounds = array<i64: 1, 1>}, {pipeline_mode = #tpu.pipeline_mode<synchronous>, transform_indices = @transform_7, window_bounds = array<i64: 32, 4>}, {pipeline_mode = #tpu.pipeline_mode<synchronous>, transform_indices = @transform_8, window_bounds = array<i64: 1, 4>}, {transform_indices = @transform_9, window_bounds = array<i64: 2, 4>}]} {
    %c0 = arith.constant 0 : index
    %c0_0 = arith.constant 0 : index
    %0 = vector.load %arg1[%c0, %c0_0] : memref<16x16xf32, #tpu.memory_space<vmem>>, vector<16x16xf32>
    %1 = arith.truncf %0 : vector<16x16xf32> to vector<16x16xbf16>
    %c0_1 = arith.constant 0 : index
    %c0_2 = arith.constant 0 : index
    %2 = vector.load %arg2[%c0_1, %c0_2] : memref<16x32xbf16, #tpu.memory_space<vmem>>, vector<16x32xbf16>
    %cst = arith.constant dense<0.000000e+00> : vector<16x32xf32>
    %3 = tpu.matmul %1, %2, %cst {dimension_numbers = #tpu.dot_dimension_numbers<[1], [0], [0], [1], [0, 0, 1, 1], [], []>} : vector<16x16xbf16>, vector<16x32xbf16>, vector<16x32xf32> -> vector<16x32xf32>
    %c0_3 = arith.constant 0 : index
    %c0_4 = arith.constant 0 : index
    %4 = vector.load %arg3[%c0_3, %c0_4] : memref<1x32xf32, #tpu.memory_space<vmem>>, vector<1x32xf32>
    %5 = vector.broadcast %4 : vector<1x32xf32> to vector<16x32xf32>
    %6 = arith.addf %3, %5 : vector<16x32xf32>
    %7 = arith.truncf %6 : vector<16x32xf32> to vector<16x32xbf16>
    %c0_5 = arith.constant 0 : index
    %c0_6 = arith.constant 0 : index
    %8 = vector.load %arg4[%c0_5, %c0_6] : memref<32x16xbf16, #tpu.memory_space<vmem>>, vector<32x16xbf16>
    %cst_7 = arith.constant dense<0.000000e+00> : vector<16x16xf32>
    %9 = tpu.matmul %7, %8, %cst_7 {dimension_numbers = #tpu.dot_dimension_numbers<[1], [0], [0], [1], [0, 0, 1, 1], [], []>} : vector<16x32xbf16>, vector<32x16xbf16>, vector<16x16xf32> -> vector<16x16xf32>
    %c0_8 = arith.constant 0 : index
    %c0_9 = arith.constant 0 : index
    %10 = vector.load %arg5[%c0_8, %c0_9] : memref<1x16xf32, #tpu.memory_space<vmem>>, vector<1x16xf32>
    %11 = vector.broadcast %10 : vector<1x16xf32> to vector<16x16xf32>
    %12 = arith.addf %9, %11 : vector<16x16xf32>
    %13 = math.tanh %12 : vector<16x16xf32>
    %14 = vector.shape_cast %13 : vector<16x16xf32> to vector<2x8x16xf32>
    %15 = vector.shape_cast %6 : vector<16x32xf32> to vector<2x8x32xf32>
    %c0_10 = arith.constant 0 : index
    %c0_11 = arith.constant 0 : index
    %16 = vector.load %arg6[%c0_10, %c0_11] : memref<1x16xf32, #tpu.memory_space<vmem>>, vector<1x16xf32>
    %17 = vector.shape_cast %16 : vector<1x16xf32> to vector<1x1x16xf32>
    %18 = vector.broadcast %17 : vector<1x1x16xf32> to vector<2x8x16xf32>
    %19 = arith.mulf %14, %18 : vector<2x8x16xf32>
    %cst_12 = arith.constant dense<0.000000e+00> : vector<2x8xf32>
    %20 = vector.multi_reduction <add>, %19, %cst_12 [2] : vector<2x8x16xf32> to vector<2x8xf32>
    %21 = vector.shape_cast %20 : vector<2x8xf32> to vector<2x8x1xf32>
    %c0_13 = arith.constant 0 : index
    %c0_14 = arith.constant 0 : index
    %22 = vector.load %arg7[%c0_13, %c0_14] : memref<1x1xf32, #tpu.memory_space<vmem>>, vector<1x1xf32>
    %23 = vector.shape_cast %22 : vector<1x1xf32> to vector<1x1x1xf32>
    %24 = vector.broadcast %23 : vector<1x1x1xf32> to vector<2x8x1xf32>
    %25 = arith.addf %21, %24 : vector<2x8x1xf32>
    %cst_15 = arith.constant dense<0xFF800000> : vector<2x1xf32>
    %26 = vector.multi_reduction <maximumf>, %25, %cst_15 [1] : vector<2x8x1xf32> to vector<2x1xf32>
    %27 = vector.shape_cast %26 : vector<2x1xf32> to vector<2x1x1xf32>
    %28 = vector.broadcast %27 : vector<2x1x1xf32> to vector<2x8x1xf32>
    %29 = arith.subf %25, %28 : vector<2x8x1xf32>
    %30 = math.exp %29 : vector<2x8x1xf32>
    %cst_16 = arith.constant dense<0.000000e+00> : vector<2x1xf32>
    %31 = vector.multi_reduction <add>, %30, %cst_16 [1] : vector<2x8x1xf32> to vector<2x1xf32>
    %32 = vector.shape_cast %31 : vector<2x1xf32> to vector<2x1x1xf32>
    %33 = tpu.reciprocal %32 {approx = true} : vector<2x1x1xf32> -> vector<2x1x1xf32>
    %34 = vector.broadcast %33 : vector<2x1x1xf32> to vector<2x8x1xf32>
    %35 = arith.mulf %30, %34 : vector<2x8x1xf32>
    %36 = vector.broadcast %35 : vector<2x8x1xf32> to vector<2x8x32xf32>
    %37 = arith.mulf %36, %15 : vector<2x8x32xf32>
    %cst_17 = arith.constant dense<0.000000e+00> : vector<2x32xf32>
    %38 = vector.multi_reduction <add>, %37, %cst_17 [1] : vector<2x8x32xf32> to vector<2x32xf32>
    %39 = arith.truncf %38 : vector<2x32xf32> to vector<2x32xbf16>
    %c0_18 = arith.constant 0 : index
    %c0_19 = arith.constant 0 : index
    %40 = vector.load %arg8[%c0_18, %c0_19] : memref<32x4xbf16, #tpu.memory_space<vmem>>, vector<32x4xbf16>
    %cst_20 = arith.constant dense<0.000000e+00> : vector<2x4xf32>
    %41 = tpu.matmul %39, %40, %cst_20 {dimension_numbers = #tpu.dot_dimension_numbers<[1], [0], [0], [1], [0, 0, 1, 1], [], []>} : vector<2x32xbf16>, vector<32x4xbf16>, vector<2x4xf32> -> vector<2x4xf32>
    %c0_21 = arith.constant 0 : index
    %c0_22 = arith.constant 0 : index
    %42 = vector.load %arg9[%c0_21, %c0_22] : memref<1x4xf32, #tpu.memory_space<vmem>>, vector<1x4xf32>
    %43 = vector.broadcast %42 : vector<1x4xf32> to vector<2x4xf32>
    %44 = arith.addf %41, %43 : vector<2x4xf32>
    %c0_23 = arith.constant 0 : index
    %c0_24 = arith.constant 0 : index
    %45 = vector.load %arg10[%c0_23, %c0_24] : memref<2x4xf32, #tpu.memory_space<vmem>>, vector<2x4xf32>
    tpu.vector_store %arg10[%c0_23, %c0_24], %44 {strides = array<i32>} : memref<2x4xf32, #tpu.memory_space<vmem>>, vector<2x4xf32>,
    return
  }
  func.func @transform_0(%arg0: i32) -> (i32, i32) {
    %c0_i32 = arith.constant 0 : i32
    %c0_i32_0 = arith.constant 0 : i32
    return %arg0, %c0_i32 : i32, i32
  }
  func.func @transform_1(%arg0: i32) -> (i32, i32) {
    %c0_i32 = arith.constant 0 : i32
    %c0_i32_0 = arith.constant 0 : i32
    %c0_i32_1 = arith.constant 0 : i32
    return %c0_i32, %c0_i32_0 : i32, i32
  }
  func.func @transform_2(%arg0: i32) -> (i32, i32) {
    %c0_i32 = arith.constant 0 : i32
    %c0_i32_0 = arith.constant 0 : i32
    %c0_i32_1 = arith.constant 0 : i32
    return %c0_i32, %c0_i32_0 : i32, i32
  }
  func.func @transform_3(%arg0: i32) -> (i32, i32) {
    %c0_i32 = arith.constant 0 : i32
    %c0_i32_0 = arith.constant 0 : i32
    %c0_i32_1 = arith.constant 0 : i32
    return %c0_i32, %c0_i32_0 : i32, i32
  }
  func.func @transform_4(%arg0: i32) -> (i32, i32) {
    %c0_i32 = arith.constant 0 : i32
    %c0_i32_0 = arith.constant 0 : i32
    %c0_i32_1 = arith.constant 0 : i32
    return %c0_i32, %c0_i32_0 : i32, i32
  }
  func.func @transform_5(%arg0: i32) -> (i32, i32) {
    %c0_i32 = arith.constant 0 : i32
    %c0_i32_0 = arith.constant 0 : i32
    %c0_i32_1 = arith.constant 0 : i32
    return %c0_i32, %c0_i32_0 : i32, i32
  }
  func.func @transform_6(%arg0: i32) -> (i32, i32) {
    %c0_i32 = arith.constant 0 : i32
    %c0_i32_0 = arith.constant 0 : i32
    %c0_i32_1 = arith.constant 0 : i32
    return %c0_i32, %c0_i32_0 : i32, i32
  }
  func.func @transform_7(%arg0: i32) -> (i32, i32) {
    %c0_i32 = arith.constant 0 : i32
    %c0_i32_0 = arith.constant 0 : i32
    %c0_i32_1 = arith.constant 0 : i32
    return %c0_i32, %c0_i32_0 : i32, i32
  }
  func.func @transform_8(%arg0: i32) -> (i32, i32) {
    %c0_i32 = arith.constant 0 : i32
    %c0_i32_0 = arith.constant 0 : i32
    %c0_i32_1 = arith.constant 0 : i32
    return %c0_i32, %c0_i32_0 : i32, i32
  }
  func.func @transform_9(%arg0: i32) -> (i32, i32) {
    %c0_i32 = arith.constant 0 : i32
    %c0_i32_0 = arith.constant 0 : i32
    return %arg0, %c0_i32 : i32, i32
  }
}

</mosaic_0001>

<bundles_post_ra>
// kernel: tpu_custom_call.1
= control target key start
LH: loop header
LB: loop body
LE: loop exit
PB: predicated region body
PF: predicated region fallthrough
CT: control target
= control target key end

     0   :  { %s569_s0 = inlined_call_operand.vmem [shape: f32[16,16], index: 0, kind: input, shape index: {}]   ;;  %s570_s1 = inlined_call_operand.vmem [shape: bf16[16,32], index: 1, kind: input, shape index: {}]   ;;  %s571_s2 = inlined_call_operand.vmem [shape: f32[1,32], index: 2, kind: input, shape index: {}]   ;;  %s572_s3 = inlined_call_operand.vmem [shape: bf16[32,16], index: 3, kind: input, shape index: {}]   ;;  %s573_s4 = inlined_call_operand.vmem [shape: f32[1,16], index: 4, kind: input, shape index: {}]   ;;  %s574_s5 = inlined_call_operand.vmem [shape: f32[1,16], index: 5, kind: input, shape index: {}]   ;;  %s575_s6 = inlined_call_operand.<no memory space> [shape: f32[1,1], index: 6, kind: input, shape index: {}]   ;;  %s576_s7 = inlined_call_operand.vmem [shape: bf16[32,4], index: 7, kind: input, shape index: {}]   ;;  %s577_s8 = inlined_call_operand.vmem [shape: f32[1,4], index: 8, kind: input, shape index: {}]   ;;  %s578_s9 = inlined_call_operand.hbm [shape: f32[2,4], index: 9, kind: output, shape index: {}]  }
   0x1   :  { %v14_v0 = vstv %s575_s6 }
   0x2   :  { %15 = vst [vmem:[#allocation2] sm:$0x1] %v14_v0 }
   0x3   :  { %v399_v1 = vld [vmem:[%s570_s1] sm:$0xff]   ;;  %v440_v2 = vmov 0.0   ;;  %v37_v4 = vld [vmem:[%s569_s0 + $0x8] sm:$0xff]  ;;  %vm54_vm0 = vcmask 130048   ;;  %vm441_vm1 = vmmov 0  }
   0x4   :  { %371 = vmatprep.subr.bf16.mxu0 %v440_v2  ;;  %v36_v3 = vld [vmem:[%s569_s0] sm:$0xff]  ;;  %377 = vmatprep.subr.bf16.mxu1 %v440_v2 }
   0x5   :  { %372 = vmatpush3.bf16.msra.mxu0 %v399_v1  ;;  %373 = vmatprep.mubr.msk.bf16.mxu0 %vm441_vm1, %v440_v2  ;;  %v38_v5 = vpack.c.bf16 %v37_v4, %v36_v3 }
   0x6   :  { %381 = vmatprep.mubr.msk.bf16.mxu1 %vm441_vm1, %v440_v2  ;;  %385 = vmatprep.subr.bf16.mxu0 %v440_v2 }
   0x7   :  { %16 = vsyncpa [#allocation4], 0  ;;  %v400_v6 = vld [vmem:[%s572_s3] sm:$0xff]   ;;  %v401_v7 = vld [vmem:[%s572_s3 + $0x8] sm:$0xff]   ;;  %vm123_vm2 = vcmask 261120   ;;  %v442_v30 = vmov 0  }
   0x8   :  { %374 = vmatmul.mubr.msk.bf16.vlgmr.msra.gmra.mrb[0].mxu0 %vm54_vm0, %v38_v5  ;;  %378 = vmatpush3.bf16.msra.mxu1 %v400_v6  ;;  %v350_v8 = vld [vmem:[%s571_s2] ss:$0 sm:$0xff]  ;;  %vm194_vm3 = vcmask 7168   ;;  %vm276_vm4 = vcmask 1041409   ;;  %s443_s25 = smov [#allocation3]   ;;  %vm334_vm5 = vcmask 25600  }
   0x9   :  { %389 = vmatprep.mubr.msk.bf16.mxu0 %vm441_vm1, %v440_v2  ;;  %379 = vmatprep.subr.bf16.mxu1 %v440_v2  ;;  %v353_v16 = vld [vmem:[%s573_s4] ss:$0 sm:$0xff]  ;;  %s342_s26 = sshll.u32 %s443_s25, 4  ;;  %s343_s26 = int_to_ptr.vmem [resolvable:$true] %s342_s26 }
   0xa   :  { %v357_v23 = vld [vmem:[%s574_s5] ss:$0 sm:$0xff]  ;;  %397 = vset.pattern.permute.xlu1 %v442_v30  ;;  %398 = vset.pattern.permute.xlu0 %v442_v30  ;;  %s416_s27 = scalar_lea.vmem %s343_s26, 32  ;;  %p421_p1 = scmp.lt.s32.totalorder %s343_s26, %s343_s26 }
   0xb   :  { %v358_v31 = vld [vmem:[#allocation2] ss:$0 sm:$0xff]  ;;  %p417_p0 = scmp.ne.s32.totalorder %s343_s26, %s416_s27  ;;  %p422_p2 = scmp.lt.s32.totalorder %s416_s27, %s416_s27 }
   0xc   :  { %380 = vmatpush3.bf16.msra.mxu1 %v401_v7 }
   0xd   :  { %p423_p3 = por %p422_p2, %p421_p1 }
   0xf   :  { %p424_p4 = pnand %p423_p3, %p417_p0 }
  0xdb   :  { %v92_v9 = vpop.f32.mrb[0].mxu0 }
  0xdc   :  { %v375_v10 = vpop.f32.mrb[1].mxu0  ;;  %v523_v12 = vadd.f32 %v350_v8, %v92_v9 }
  0xdd   :  { %v95_v11 = vpop.f32.mrb[2].mxu0 }
  0xde   :  { %v525_v13 = vadd.f32 %v350_v8, %v95_v11  ;;  %v376_v14 = vpop.f32.mrb[3].mxu0  ;;  %v402_v11 = vld [vmem:[%s576_s7] sm:$0xff]  }
  0xdf   :  { %386 = vmatpush3.bf16.msra.mxu0 %v402_v11  ;;  %v403_v14 = vld [vmem:[%s576_s7 + $0x8] sm:$0xff]  }
  0xe0   :  { %v99_v15 = vpack.c.bf16 %v525_v13, %v523_v12  ;;  %387 = vmatprep.subr.bf16.mxu0 %v440_v2 }
  0xe2   :  { %382 = vmatmul.mubr.msk.bf16.vlgmr.msra.gmra.mrb[0].mxu1 %vm123_vm2, %v99_v15 }
  0xe3   :  { %388 = vmatpush3.bf16.msra.mxu0 %v403_v14 }
 0x1b5   :  { %v161_v17 = vpop.f32.mrb[0].mxu1 }
 0x1b6   :  { %v162_v18 = vadd.f32 %v353_v16, %v161_v17  ;;  %v383_v19 = vpop.f32.mrb[1].mxu1 }
 0x1b7   :  { %v164_v20 = vpop.f32.mrb[2].mxu1 }
 0x1b8   :  { %404 = vtanh.f32 %v162_v18  ;;  %v165_v21 = vadd.f32 %v353_v16, %v164_v20  ;;  %v384_v22 = vpop.f32.mrb[3].mxu1 }
 0x1ba   :  { %406 = vtanh.f32 %v165_v21 }
 0x1c2   :  { %v405_v24 = vpop.eup %404 }
 0x1c3   :  { %v177_v25 = vmul.f32 %v405_v24, %v357_v23 }
 0x1c4   :  { %v407_v26 = vpop.eup %406 }
 0x1c5   :  { %v179_v27 = vsel %vm54_vm0, %v177_v25, 0.0  ;;  %v178_v28 = vmul.f32 %v407_v26, %v357_v23 }
 0x1c6   :  { %180 = vadd.xlane.f32.xlu0 %v179_v27 }
 0x1c7   :  { %v182_v29 = vsel %vm54_vm0, %v178_v28, 0.0 }
 0x1ca   :  { %183 = vadd.xlane.f32.xlu0 %v182_v29 }
 0x253   :  { %v181_v32 = vpop.xlane.xlu0 %180 }
 0x254   :  { %v192_v33 = vadd.f32 %v358_v31, %v181_v32 }
 0x256   :  { %v195_v34 = vsel %vm194_vm3, %v192_v33, -inf }
 0x257   :  { %v196_v35 = vrot.slane %v195_v34, 4  ;;  %v184_v36 = vpop.xlane.xlu0 %183 }
 0x258   :  { %v193_v37 = vadd.f32 %v358_v31, %v184_v36  ;;  %v359_v36 = vld [vmem:[%s577_s8] ss:$0 sm:$0xff] }
 0x259   :  { %v197_v38 = vmax.f32 %v195_v34, %v196_v35 }
 0x25a   :  { %v202_v39 = vsel %vm194_vm3, %v193_v37, -inf }
 0x25b   :  { %v198_v40 = vrot.slane %v197_v38, 2  ;;  %v203_v41 = vrot.slane %v202_v39, 4 }
 0x25d   :  { %v199_v42 = vmax.f32 %v197_v38, %v198_v40  ;;  %v204_v43 = vmax.f32 %v202_v39, %v203_v41 }
 0x25f   :  { %v200_v44 = vrot.slane %v199_v42, 1  ;;  %v205_v45 = vrot.slane %v204_v43, 2 }
 0x261   :  { %v201_v46 = vmax.f32 %v199_v42, %v200_v44  ;;  %v206_v47 = vmax.f32 %v204_v43, %v205_v45 }
 0x263   :  { %v209_v48 = vsub.f32 %v192_v33, %v201_v46  ;;  %v207_v49 = vrot.slane %v206_v47, 1 }
 0x265   :  { %v211_v50 = vmul.f32 1.442695, %v209_v48  ;;  %v208_v51 = vmax.f32 %v206_v47, %v207_v49 }
 0x267   :  { %408 = vpow2.f32 %v211_v50  ;;  %v210_v52 = vsub.f32 %v193_v37, %v208_v51 }
 0x269   :  { %v213_v53 = vmul.f32 1.442695, %v210_v52 }
 0x26b   :  { %410 = vpow2.f32 %v213_v53 }
 0x271   :  { %v409_v54 = vpop.eup %408 }
 0x272   :  { %v215_v55 = vsel %vm194_vm3, %v409_v54, 0.0 }
 0x273   :  { %v216_v56 = vrot.slane %v215_v55, 4 }
 0x275   :  { %v411_v57 = vpop.eup %410  ;;  %v217_v58 = vadd.f32 %v216_v56, %v215_v55 }
 0x276   :  { %v222_v59 = vsel %vm194_vm3, %v411_v57, 0.0 }
 0x277   :  { %v218_v60 = vrot.slane %v217_v58, 2  ;;  %v223_v61 = vrot.slane %v222_v59, 4 }
 0x279   :  { %v219_v62 = vadd.f32 %v218_v60, %v217_v58  ;;  %v224_v63 = vadd.f32 %v223_v61, %v222_v59 }
 0x27b   :  { %v225_v0 = vrot.slane %v224_v63, 2  ;;  %v220_v1 = vrot.slane %v219_v62, 1 }
 0x27d   :  { %v221_v3 = vadd.f32 %v220_v1, %v219_v62  ;;  %v226_v4 = vadd.f32 %v225_v0, %v224_v63 }
 0x27f   :  { %412 = vrcp.f32 %v221_v3  ;;  %v227_v5 = vrot.slane %v226_v4, 1 }
 0x281   :  { %v228_v6 = vadd.f32 %v227_v5, %v226_v4 }
 0x283   :  { %414 = vrcp.f32 %v228_v6 }
 0x289   :  { %v413_v7 = vpop.eup %412 }
 0x28a   :  { %v231_v8 = vmul.f32 %v413_v7, %v409_v54 }
 0x28c   :  { %235 = vperm.xlu1 %397, %v231_v8  }
 0x28d   :  { %v415_v9 = vpop.eup %414 }
 0x28e   :  { %v232_v10 = vmul.f32 %v415_v9, %v411_v57 }
 0x290   :  { %240 = vperm.xlu1 %397, %v232_v10  }
 0x30b   :  { %v236_v15 = vpop.permute.xlu1 %235 }
 0x30c   :  { %v243_v16 = vmul.f32 %v236_v15, %v523_v12 }
 0x30e   :  { %v245_v17 = vsel %vm123_vm2, %v243_v16, 0.0 }
 0x30f   :  { %v246_v18 = vrot.slane %v245_v17, 4  ;;  %v241_v19 = vpop.permute.xlu1 %240 }
 0x310   :  { %v244_v20 = vmul.f32 %v241_v19, %v525_v13 }
 0x311   :  { %v247_v21 = vadd.f32 %v246_v18, %v245_v17 }
 0x312   :  { %v252_v22 = vsel %vm123_vm2, %v244_v20, 0.0 }
 0x313   :  { %v248_v23 = vrot.slane %v247_v21, 2  ;;  %v253_v24 = vrot.slane %v252_v22, 4 }
 0x315   :  { %v249_v2 = vadd.f32 %v248_v23, %v247_v21  ;;  %v254_v25 = vadd.f32 %v253_v24, %v252_v22 }
 0x317   :  { %v250_v26 = vrot.slane %v249_v2, 1  ;;  %v255_v27 = vrot.slane %v254_v25, 2 }
 0x319   :  { %v251_v28 = vadd.f32 %v250_v26, %v249_v2  ;;  %v256_v29 = vadd.f32 %v255_v27, %v254_v25 }
 0x31b   :  { %v257_v30 = vrot.slane %v256_v29, 1  ;;  %v259_v31 = vpack.c.bf16 %v251_v28, %v251_v28 }
 0x31d   :  { %v258_v12 = vadd.f32 %v257_v30, %v256_v29  ;;  %v274_v33 = vunpack.c.l.b16 %v259_v31 }
 0x31f   :  { %v260_v32 = vpack.c.bf16 %v258_v12, %v258_v12 }
 0x321   :  { %v275_v34 = vunpack.c.l.b16 %v260_v32 }
 0x323   :  { %v277_v35 = vsel %vm276_vm4, %v275_v34, %v274_v33 }
 0x324   :  { %v278_v13 = vpack.c.b16 %v277_v35, %v277_v35 }
 0x326   :  { %390 = vmatmul.mubr.msk.bf16.vlgmr.msra.gmra.mrb[4].mxu0 %vm123_vm2, %v278_v13 }
 0x3f9   :  { %v328_v37 = vpop.f32.mrb[4].mxu0 }
 0x3fa   :  { %v329_v38 = vadd.f32 %v359_v36, %v328_v37  ;;  %v391_v39 = vpop.f32.mrb[5].mxu0 }
 0x3fb   :  { %v331_v40 = vpop.f32.mrb[6].mxu0 }
 0x3fc   :  { %v392_v41 = vpop.f32.mrb[7].mxu0  ;;  %335 = vst.msk [vmem:[#allocation3] sm:$0x3] %vm334_vm5, %v329_v38 }
 0x3fd   :  { %427 = shalt.err (!%p424_p4)
}
 0x3fe   :  { %s428_s8 = scalar_lea.hbm %s578_s9, 32 }
 0x3ff   :  { %p429_p5 = scmp.ne.s32.totalorder %s578_s9, %s428_s8  ;;  %p432_p6 = scmp.lt.u32.totalorder %s428_s8, %s578_s9 }
 0x401   :  { %p434_p7 = pnand %p432_p6, %p429_p5 }
 0x403   :  { %437 = shalt.err (!%p434_p7)
}
 0x404   :  { %345 = dma.vmem_to_hbm [thread:$0]  %s343_s26, 32, %s578_s9, [#allocation4]  }
 0x405   :  { %438 = dma.done.wait [#allocation4], 32  }
 0x406   :  { %439 = vsyncadd [#allocation4], 4294967264 }
 0x407   :  { %349 = vsyncpa [#allocation4], 1 }

</bundles_post_ra>
